<compile_context>
chip_gen: v7x
topology: tpu7x:2x2x1
jax: 0.10.0
libtpu: 0.0.40
codegen_flags: <defaults>
</compile_context>

<pallas_src>
import functools

import jax
import jax.numpy as jnp
import numpy as np
from jax.experimental import pallas as pl
from jax.experimental.pallas import tpu as pltpu


def _round_up(x, m):
    return (x + m - 1) // m * m


def _softplus(x):
    return jnp.logaddexp(x, 0.0)


# -----------------------------------------------------------------------------
# Kernel: one grid step == one timestep of the read head.
# -----------------------------------------------------------------------------
def ntm_read_head_kernel(x_ref, wold_ref, wht_ref, hb_ref, mem_ref, mnorm_ref,
                         w_out_ref, r_out_ref, wfin_ref, w_carry, *, N, M):
    t = pl.program_id(0)

    # Initialize the W carry from W_old on the first step only.
    @pl.when(t == 0)
    def _():
        w_carry[...] = wold_ref[...].astype(jnp.float32)

    _, B, PADW = w_out_ref.shape
    PADR = r_out_ref.shape[2]

    x = x_ref[0]                 # (B, C)   matmul dtype (bf16)
    mem = mem_ref[...]           # (N, M)   matmul dtype (bf16)
    m_norm = mnorm_ref[...]      # (1, N)   f32 (precomputed outside, shared)
    w_old = w_carry[...]         # (B, N)   f32

    # ---- head_output linear: out = x @ W^T + b (weight pre-transposed, L padded
    #      to 128 lanes; bf16 operands, f32 accumulate on the MXU) ----
    out = jnp.dot(x, wht_ref[...], preferred_element_type=jnp.float32) + hb_ref[...]

    # ---- split(read_lengths=[M,1,1,3,1]) + fine_tune_params (all f32) ----
    k = jnp.tanh(out[:, 0:M])                            # (B, M)
    beta = _softplus(out[:, M:M + 1])                    # (B, 1)
    g = jax.nn.sigmoid(out[:, M + 1:M + 2])              # (B, 1)
    s_logits = out[:, M + 2:M + 5]                       # (B, 3)
    gamma = 1.0 + _softplus(out[:, M + 5:M + 6])         # (B, 1)

    # softmax over the 3 shift taps (manual; approx reciprocal -> EUP slot)
    s_exp = jnp.exp(s_logits - jnp.max(s_logits, axis=1, keepdims=True))
    s = s_exp * pl.reciprocal(jnp.sum(s_exp, axis=1, keepdims=True), approx=True)

    # ---- content addressing: softmax(beta * cosine_similarity(k, memory)) ----
    dots = jax.lax.dot_general(k.astype(mem.dtype), mem, (((1,), (1,)), ((), ())),
                               preferred_element_type=jnp.float32)    # (B, N)
    k_norm = jnp.sqrt(jnp.sum(k * k, axis=1, keepdims=True))          # (B, 1)
    cos = dots * pl.reciprocal(k_norm * m_norm + 1e-16, approx=True)  # (B, N)

    z = beta * cos
    z_exp = jnp.exp(z - jnp.max(z, axis=1, keepdims=True))
    w_c = z_exp * pl.reciprocal(jnp.sum(z_exp, axis=1, keepdims=True), approx=True)

    # ---- gate interpolation ----
    w_g = g * w_c + (1.0 - g) * w_old

    # ---- circular convolution with the 3-tap shift kernel s ----
    if N % 128 == 0:
        w_m1 = pltpu.roll(w_g, 1, axis=1)     # XLU lane rotate (free slot)
        w_p1 = pltpu.roll(w_g, -1, axis=1)
    else:
        w_m1 = jnp.roll(w_g, 1, axis=1)
        w_p1 = jnp.roll(w_g, -1, axis=1)
    w_tilde = w_m1 * s[:, 0:1] + w_g * s[:, 1:2] + w_p1 * s[:, 2:3]

    # ---- sharpening ----
    w_pow = jnp.exp(gamma * jnp.log(w_tilde + 1e-16))
    w_new = w_pow * pl.reciprocal(jnp.sum(w_pow, axis=1, keepdims=True) + 1e-16,
                                  approx=True)

    # ---- memory read ----
    r = jnp.dot(w_new.astype(mem.dtype), mem, preferred_element_type=jnp.float32)

    # carry W to the next step; keep the final-W (aliased) output up to date
    w_carry[...] = w_new
    wfin_ref[...] = w_new

    # Lane-dense per-step outputs (padded to 128 lanes; wrapper slices).
    w_out_ref[0] = jnp.zeros((B, PADW), jnp.float32)
    w_out_ref[0, :, 0:N] = w_new
    r_out_ref[0] = jnp.zeros((B, PADR), jnp.float32)
    r_out_ref[0, :, 0:M] = r


# -----------------------------------------------------------------------------
# One-time parameter preparation (hoisted out of the per-step / per-call path).
# -----------------------------------------------------------------------------
def prepare_read_head_params(head_w, head_b, memory, matmul_dtype=jnp.bfloat16):
    """head_w: (L, C) PyTorch-style Linear weight; head_b: (L,); memory: (N, M)."""
    L, C = head_w.shape
    LP = _round_up(L, 128)
    wht = jnp.zeros((C, LP), matmul_dtype).at[:, :L].set(head_w.T.astype(matmul_dtype))
    hb = jnp.zeros((1, LP), jnp.float32).at[:, :L].set(
        head_b.astype(jnp.float32)[None, :])
    mem = memory.astype(matmul_dtype)
    m_norm = jnp.sqrt(
        jnp.sum(memory.astype(jnp.float32) ** 2, axis=1))[None, :]  # (1, N)
    return dict(wht=wht, hb=hb, mem=mem, m_norm=m_norm)


# -----------------------------------------------------------------------------
# Sequence forward: runs the read head for T controller steps in one call.
# -----------------------------------------------------------------------------
@jax.jit
def ntm_read_head_sequence(x_seq, w_old, wht, hb, mem, m_norm):
    T, B, C = x_seq.shape
    N, M = mem.shape
    LP = wht.shape[1]
    PADW = _round_up(N, 128)
    PADR = _round_up(M, 128)

    x_seq = x_seq.astype(wht.dtype)
    w_old = w_old.astype(jnp.float32)

    kernel = functools.partial(ntm_read_head_kernel, N=N, M=M)

    w_pad, r_pad, w_final = pl.pallas_call(
        kernel,
        out_shape=(
            jax.ShapeDtypeStruct((T, B, PADW), jnp.float32),   # per-step W (padded)
            jax.ShapeDtypeStruct((T, B, PADR), jnp.float32),   # per-step read (padded)
            jax.ShapeDtypeStruct((B, N), jnp.float32),         # final W (aliased w_old)
        ),
        grid_spec=pltpu.PrefetchScalarGridSpec(
            num_scalar_prefetch=0,
            grid=(T,),
            in_specs=[
                pl.BlockSpec((1, B, C), lambda t: (t, 0, 0)),   # x_t   (streamed)
                pl.BlockSpec((B, N), lambda t: (0, 0)),         # W_old (resident)
                pl.BlockSpec((C, LP), lambda t: (0, 0)),        # head W^T (resident)
                pl.BlockSpec((1, LP), lambda t: (0, 0)),        # head bias (resident)
                pl.BlockSpec((N, M), lambda t: (0, 0)),         # memory (resident)
                pl.BlockSpec((1, N), lambda t: (0, 0)),         # ||mem_row|| (resident)
            ],
            out_specs=(
                pl.BlockSpec((1, B, PADW), lambda t: (t, 0, 0)),
                pl.BlockSpec((1, B, PADR), lambda t: (t, 0, 0)),
                pl.BlockSpec((B, N), lambda t: (0, 0)),
            ),
            scratch_shapes=[pltpu.VMEM((B, N), jnp.float32)],   # W carry across steps
        ),
        compiler_params=pltpu.CompilerParams(
            dimension_semantics=("arbitrary",)),
        input_output_aliases={1: 2},   # w_old -> final W (scan-carry friendly)
    )(x_seq, w_old, wht, hb, mem, m_norm)

    return w_pad[:, :, :N], r_pad[:, :, :M], w_final


def ntm_read_head_forward(rnn_embeddings, w_old, params):
    """Single-step forward, matching NTM_read_head.forward(rnn_embeddings, W_old)."""
    w_seq, r_seq, _ = ntm_read_head_sequence(
        rnn_embeddings[None, ...], w_old,
        params["wht"], params["hb"], params["mem"], params["m_norm"])
    return w_seq[0], r_seq[0]


# -----------------------------------------------------------------------------
# Pure-JAX references (module semantics; matmul_dtype=bf16 mirrors the kernel's
# MXU operand precision, matmul_dtype=f32 mirrors the PyTorch module exactly).
# -----------------------------------------------------------------------------
def _reference_step(x, w_prev, head_w, head_b, memory, matmul_dtype=jnp.float32):
    N, M = memory.shape
    md = matmul_dtype
    out = jnp.dot(x.astype(md), head_w.T.astype(md),
                  preferred_element_type=jnp.float32) + head_b[None, :]
    k = jnp.tanh(out[:, 0:M])
    beta = _softplus(out[:, M:M + 1])
    g = jax.nn.sigmoid(out[:, M + 1:M + 2])
    s = jax.nn.softmax(out[:, M + 2:M + 5], axis=1)
    gamma = 1.0 + _softplus(out[:, M + 5:M + 6])
    dots = jnp.dot(k.astype(md), memory.astype(md).T,
                   preferred_element_type=jnp.float32)
    k_norm = jnp.sqrt(jnp.sum(k * k, axis=1, keepdims=True))
    m_norm = jnp.sqrt(jnp.sum(memory.astype(jnp.float32) ** 2, axis=1))[None, :]
    cos = dots / (k_norm * m_norm + 1e-16)
    w_c = jax.nn.softmax(beta * cos, axis=1)
    w_g = g * w_c + (1.0 - g) * w_prev
    w_tilde = (jnp.roll(w_g, 1, axis=1) * s[:, 0:1]
               + w_g * s[:, 1:2]
               + jnp.roll(w_g, -1, axis=1) * s[:, 2:3])
    w_pow = jnp.exp(gamma * jnp.log(w_tilde + 1e-16))
    w_new = w_pow / (jnp.sum(w_pow, axis=1, keepdims=True) + 1e-16)
    r = jnp.dot(w_new.astype(md), memory.astype(md),
                preferred_element_type=jnp.float32)
    return w_new, r


def _reference_sequence(x_seq, w_old, head_w, head_b, memory,
                        matmul_dtype=jnp.float32):
    w = w_old
    ws, rs = [], []
    for t in range(x_seq.shape[0]):
        w, r = _reference_step(x_seq[t], w, head_w, head_b, memory, matmul_dtype)
        ws.append(w)
        rs.append(r)
    return jnp.stack(ws), jnp.stack(rs)


if __name__ == "__main__":
    B, C, N, M, T = 2, 32, 16, 8, 6     # batch, controller_size, memory N/M, steps
    L = M + 1 + 1 + 3 + 1               # sum(read_lengths) = 14

    key = jax.random.PRNGKey(0)
    k1, k2, k3, k4, k5, k6 = jax.random.split(key, 6)

    # head_output: Linear(C, L); xavier_uniform_(gain=1.4), bias ~ N(0, 0.01)
    bound = 1.4 * float(np.sqrt(6.0 / (C + L)))
    head_w = jax.random.uniform(k1, (L, C), jnp.float32, -bound, bound)
    head_b = 0.01 * jax.random.normal(k2, (L,), jnp.float32)

    # memory matrix (deterministic synthetic init)
    memory = 0.1 * jax.random.normal(k3, (N, M), jnp.float32)

    # controller embeddings for T steps
    x_seq = jax.random.normal(k4, (T, B, C), jnp.float32)

    # W_old from create_new_state(): softmax(weight_init(ones(1))) repeated over batch
    wi_w = jax.random.uniform(k5, (N, 1), jnp.float32, -1.0, 1.0)
    wi_b = jax.random.uniform(k6, (N,), jnp.float32, -1.0, 1.0)
    w_old = jnp.tile(jax.nn.softmax(wi_w[:, 0] + wi_b)[None, :], (B, 1))

    # One-time hoisted parameter prep (transpose, pad to 128 lanes, bf16, ||mem||).
    params = prepare_read_head_params(head_w, head_b, memory,
                                      matmul_dtype=jnp.bfloat16)

    # ---- single-step forward (module semantics) ----
    W1, r1 = ntm_read_head_forward(x_seq[0], w_old, params)

    # ---- multi-step forward (recurrence amortized inside one pallas_call) ----
    w_seq, r_seq, w_final = ntm_read_head_sequence(
        x_seq, w_old, params["wht"], params["hb"], params["mem"], params["m_norm"])
    jax.block_until_ready((W1, r1, w_seq, r_seq, w_final))

    assert W1.shape == (B, N) and r1.shape == (B, M)
    assert w_seq.shape == (T, B, N) and r_seq.shape == (T, B, M)
    assert w_final.shape == (B, N)

    # Mirror reference (bf16 MXU operands like the kernel; only approx-reciprocal
    # differs) -> tight-ish check.
    wm_seq, rm_seq = _reference_sequence(x_seq, w_old, head_w, head_b, memory,
                                         matmul_dtype=jnp.bfloat16)
    np.testing.assert_allclose(np.asarray(w_seq), np.asarray(wm_seq),
                               rtol=1e-2, atol=1e-2)
    np.testing.assert_allclose(np.asarray(r_seq), np.asarray(rm_seq),
                               rtol=1e-2, atol=1e-2)

    # Full-f32 module reference -> looser check (bf16 operands + approx rcp).
    wf_seq, rf_seq = _reference_sequence(x_seq, w_old, head_w, head_b, memory,
                                         matmul_dtype=jnp.float32)
    np.testing.assert_allclose(np.asarray(w_seq), np.asarray(wf_seq),
                               rtol=2e-2, atol=2e-2)
    np.testing.assert_allclose(np.asarray(r_seq), np.asarray(rf_seq),
                               rtol=2e-2, atol=2e-2)

    # Single-step call matches step 0 of the sequence, and the aliased final-W
    # output matches the last per-step W.
    np.testing.assert_allclose(np.asarray(W1), np.asarray(w_seq[0]),
                               rtol=1e-6, atol=1e-6)
    np.testing.assert_allclose(np.asarray(r1), np.asarray(r_seq[0]),
                               rtol=1e-6, atol=1e-6)
    np.testing.assert_allclose(np.asarray(w_final), np.asarray(w_seq[-1]),
                               rtol=1e-6, atol=1e-6)

    print("KERNEL_OK")
</pallas_src>

<mosaic_0001>
module attributes {stable_mosaic.version = 11 : i64} {
  func.func @ntm_read_head_kernel(%arg0: i32, %arg1: memref<1x2x32xbf16, #tpu.memory_space<vmem>>, %arg2: memref<2x16xf32, #tpu.memory_space<vmem>>, %arg3: memref<32x128xbf16, #tpu.memory_space<vmem>>, %arg4: memref<1x128xf32, #tpu.memory_space<vmem>>, %arg5: memref<16x8xbf16, #tpu.memory_space<vmem>>, %arg6: memref<1x16xf32, #tpu.memory_space<vmem>>, %arg7: memref<1x2x128xf32, #tpu.memory_space<vmem>>, %arg8: memref<1x2x128xf32, #tpu.memory_space<vmem>>, %arg9: memref<2x16xf32, #tpu.memory_space<vmem>>, %arg10: memref<2x16xf32, #tpu.memory_space<vmem>>) attributes {dimension_semantics = [#tpu.dimension_semantics<arbitrary>], iteration_bounds = array<i64: 1>, scalar_prefetch = 0 : i64, scratch_operands = 1 : i64, tpu.core_type = #tpu.core_type<tc>, window_params = [{transform_indices = @transform_0, window_bounds = array<i64: 1, 2, 32>}, {pipeline_mode = #tpu.pipeline_mode<synchronous>, transform_indices = @transform_1, window_bounds = array<i64: 2, 16>}, {pipeline_mode = #tpu.pipeline_mode<synchronous>, transform_indices = @transform_2, window_bounds = array<i64: 32, 128>}, {pipeline_mode = #tpu.pipeline_mode<synchronous>, transform_indices = @transform_3, window_bounds = array<i64: 1, 128>}, {pipeline_mode = #tpu.pipeline_mode<synchronous>, transform_indices = @transform_4, window_bounds = array<i64: 16, 8>}, {pipeline_mode = #tpu.pipeline_mode<synchronous>, transform_indices = @transform_5, window_bounds = array<i64: 1, 16>}, {transform_indices = @transform_6, window_bounds = array<i64: 1, 2, 128>}, {transform_indices = @transform_7, window_bounds = array<i64: 1, 2, 128>}, {pipeline_mode = #tpu.pipeline_mode<synchronous>, transform_indices = @transform_8, window_bounds = array<i64: 2, 16>}]} {
    %c0_i32 = arith.constant 0 : i32
    %0 = arith.cmpi eq, %arg0, %c0_i32 : i32
    %1 = arith.extui %0 : i1 to i32
    %c0_i32_0 = arith.constant 0 : i32
    %2 = arith.cmpi ne, %1, %c0_i32_0 : i32
    scf.if %2 {
      %c0_49 = arith.constant 0 : index
      %c0_50 = arith.constant 0 : index
      %144 = vector.load %arg2[%c0_49, %c0_50] : memref<2x16xf32, #tpu.memory_space<vmem>>, vector<2x16xf32>
      %c0_51 = arith.constant 0 : index
      %c0_52 = arith.constant 0 : index
      %145 = vector.load %arg10[%c0_51, %c0_52] : memref<2x16xf32, #tpu.memory_space<vmem>>, vector<2x16xf32>
      tpu.vector_store %arg10[%c0_51, %c0_52], %144 {strides = array<i32>} : memref<2x16xf32, #tpu.memory_space<vmem>>, vector<2x16xf32>,
    } else {
    }
    %c0 = arith.constant 0 : index
    %c0_1 = arith.constant 0 : index
    %c0_2 = arith.constant 0 : index
    %3 = vector.load %arg1[%c0, %c0_1, %c0_2] : memref<1x2x32xbf16, #tpu.memory_space<vmem>>, vector<1x2x32xbf16>
    %4 = vector.shape_cast %3 : vector<1x2x32xbf16> to vector<2x32xbf16>
    %c0_3 = arith.constant 0 : index
    %c0_4 = arith.constant 0 : index
    %5 = vector.load %arg5[%c0_3, %c0_4] : memref<16x8xbf16, #tpu.memory_space<vmem>>, vector<16x8xbf16>
    %c0_5 = arith.constant 0 : index
    %c0_6 = arith.constant 0 : index
    %6 = vector.load %arg6[%c0_5, %c0_6] : memref<1x16xf32, #tpu.memory_space<vmem>>, vector<1x16xf32>
    %c0_7 = arith.constant 0 : index
    %c0_8 = arith.constant 0 : index
    %7 = vector.load %arg10[%c0_7, %c0_8] : memref<2x16xf32, #tpu.memory_space<vmem>>, vector<2x16xf32>
    %c0_9 = arith.constant 0 : index
    %c0_10 = arith.constant 0 : index
    %8 = vector.load %arg3[%c0_9, %c0_10] : memref<32x128xbf16, #tpu.memory_space<vmem>>, vector<32x128xbf16>
    %cst = arith.constant dense<0.000000e+00> : vector<2x128xf32>
    %9 = tpu.matmul %4, %8, %cst {dimension_numbers = #tpu.dot_dimension_numbers<[1], [0], [0], [1], [0, 0, 1, 1], [], []>} : vector<2x32xbf16>, vector<32x128xbf16>, vector<2x128xf32> -> vector<2x128xf32>
    %c0_11 = arith.constant 0 : index
    %c0_12 = arith.constant 0 : index
    %10 = vector.load %arg4[%c0_11, %c0_12] : memref<1x128xf32, #tpu.memory_space<vmem>>, vector<1x128xf32>
    %11 = vector.broadcast %10 : vector<1x128xf32> to vector<2x128xf32>
    %12 = arith.addf %9, %11 : vector<2x128xf32>
    %13 = vector.extract_strided_slice %12 {offsets = [0, 0], sizes = [2, 8], strides = [1, 1]} : vector<2x128xf32> to vector<2x8xf32>
    %14 = math.tanh %13 : vector<2x8xf32>
    %15 = vector.extract_strided_slice %12 {offsets = [0, 8], sizes = [2, 1], strides = [1, 1]} : vector<2x128xf32> to vector<2x1xf32>
    %cst_13 = arith.constant 0.000000e+00 : f32
    %16 = vector.broadcast %cst_13 : f32 to vector<2x1xf32>
    %17 = arith.maximumf %15, %16 : vector<2x1xf32>
    %18 = vector.broadcast %cst_13 : f32 to vector<2x1xf32>
    %19 = arith.subf %15, %18 : vector<2x1xf32>
    %20 = arith.cmpf one, %19, %19 : vector<2x1xf32>
    %21 = vector.broadcast %cst_13 : f32 to vector<2x1xf32>
    %22 = arith.addf %15, %21 : vector<2x1xf32>
    %23 = math.absf %19 : vector<2x1xf32>
    %cst_14 = arith.constant 0.000000e+00 : f32
    %24 = vector.broadcast %cst_14 : f32 to vector<2x1xf32>
    %25 = arith.subf %24, %23 : vector<2x1xf32>
    %26 = math.exp %25 : vector<2x1xf32>
    %27 = math.log1p %26 : vector<2x1xf32>
    %28 = arith.addf %17, %27 : vector<2x1xf32>
    %29 = arith.select %20, %22, %28 : vector<2x1xi1>, vector<2x1xf32>
    %30 = vector.extract_strided_slice %12 {offsets = [0, 9], sizes = [2, 1], strides = [1, 1]} : vector<2x128xf32> to vector<2x1xf32>
    %31 = arith.negf %30 : vector<2x1xf32>
    %32 = math.exp %31 : vector<2x1xf32>
    %cst_15 = arith.constant 1.000000e+00 : f32
    %33 = vector.broadcast %cst_15 : f32 to vector<2x1xf32>
    %34 = arith.addf %33, %32 : vector<2x1xf32>
    %35 = arith.divf %33, %34 : vector<2x1xf32>
    %36 = vector.extract_strided_slice %12 {offsets = [0, 10], sizes = [2, 3], strides = [1, 1]} : vector<2x128xf32> to vector<2x3xf32>
    %37 = vector.extract_strided_slice %12 {offsets = [0, 13], sizes = [2, 1], strides = [1, 1]} : vector<2x128xf32> to vector<2x1xf32>
    %cst_16 = arith.constant 0.000000e+00 : f32
    %38 = vector.broadcast %cst_16 : f32 to vector<2x1xf32>
    %39 = arith.maximumf %37, %38 : vector<2x1xf32>
    %40 = vector.broadcast %cst_16 : f32 to vector<2x1xf32>
    %41 = arith.subf %37, %40 : vector<2x1xf32>
    %42 = arith.cmpf one, %41, %41 : vector<2x1xf32>
    %43 = vector.broadcast %cst_16 : f32 to vector<2x1xf32>
    %44 = arith.addf %37, %43 : vector<2x1xf32>
    %45 = math.absf %41 : vector<2x1xf32>
    %cst_17 = arith.constant 0.000000e+00 : f32
    %46 = vector.broadcast %cst_17 : f32 to vector<2x1xf32>
    %47 = arith.subf %46, %45 : vector<2x1xf32>
    %48 = math.exp %47 : vector<2x1xf32>
    %49 = math.log1p %48 : vector<2x1xf32>
    %50 = arith.addf %39, %49 : vector<2x1xf32>
    %51 = arith.select %42, %44, %50 : vector<2x1xi1>, vector<2x1xf32>
    %cst_18 = arith.constant 1.000000e+00 : f32
    %52 = vector.broadcast %cst_18 : f32 to vector<2x1xf32>
    %53 = arith.addf %52, %51 : vector<2x1xf32>
    %cst_19 = arith.constant dense<0xFF800000> : vector<2xf32>
    %54 = vector.multi_reduction <maximumf>, %36, %cst_19 [1] : vector<2x3xf32> to vector<2xf32>
    %55 = vector.shape_cast %54 : vector<2xf32> to vector<2x1xf32>
    %56 = vector.broadcast %55 : vector<2x1xf32> to vector<2x3xf32>
    %57 = arith.subf %36, %56 : vector<2x3xf32>
    %58 = math.exp %57 : vector<2x3xf32>
    %cst_20 = arith.constant dense<0.000000e+00> : vector<2xf32>
    %59 = vector.multi_reduction <add>, %58, %cst_20 [1] : vector<2x3xf32> to vector<2xf32>
    %60 = vector.shape_cast %59 : vector<2xf32> to vector<2x1xf32>
    %61 = tpu.reciprocal %60 {approx = true} : vector<2x1xf32> -> vector<2x1xf32>
    %62 = vector.broadcast %61 : vector<2x1xf32> to vector<2x3xf32>
    %63 = arith.mulf %58, %62 : vector<2x3xf32>
    %64 = arith.truncf %14 : vector<2x8xf32> to vector<2x8xbf16>
    %cst_21 = arith.constant dense<0.000000e+00> : vector<2x16xf32>
    %65 = tpu.matmul %64, %5, %cst_21 {dimension_numbers = #tpu.dot_dimension_numbers<[1], [1], [0], [0], [0, 0, 1, 0], [], []>} : vector<2x8xbf16>, vector<16x8xbf16>, vector<2x16xf32> -> vector<2x16xf32>
    %66 = arith.mulf %14, %14 : vector<2x8xf32>
    %cst_22 = arith.constant dense<0.000000e+00> : vector<2xf32>
    %67 = vector.multi_reduction <add>, %66, %cst_22 [1] : vector<2x8xf32> to vector<2xf32>
    %68 = vector.shape_cast %67 : vector<2xf32> to vector<2x1xf32>
    %69 = math.sqrt %68 : vector<2x1xf32>
    %70 = vector.broadcast %69 : vector<2x1xf32> to vector<2x16xf32>
    %71 = vector.broadcast %6 : vector<1x16xf32> to vector<2x16xf32>
    %72 = arith.mulf %70, %71 : vector<2x16xf32>
    %cst_23 = arith.constant 1.000000e-16 : f32
    %73 = vector.broadcast %cst_23 : f32 to vector<2x16xf32>
    %74 = arith.addf %72, %73 : vector<2x16xf32>
    %75 = tpu.reciprocal %74 {approx = true} : vector<2x16xf32> -> vector<2x16xf32>
    %76 = arith.mulf %65, %75 : vector<2x16xf32>
    %77 = vector.broadcast %29 : vector<2x1xf32> to vector<2x16xf32>
    %78 = arith.mulf %77, %76 : vector<2x16xf32>
    %cst_24 = arith.constant dense<0xFF800000> : vector<2xf32>
    %79 = vector.multi_reduction <maximumf>, %78, %cst_24 [1] : vector<2x16xf32> to vector<2xf32>
    %80 = vector.shape_cast %79 : vector<2xf32> to vector<2x1xf32>
    %81 = vector.broadcast %80 : vector<2x1xf32> to vector<2x16xf32>
    %82 = arith.subf %78, %81 : vector<2x16xf32>
    %83 = math.exp %82 : vector<2x16xf32>
    %cst_25 = arith.constant dense<0.000000e+00> : vector<2xf32>
    %84 = vector.multi_reduction <add>, %83, %cst_25 [1] : vector<2x16xf32> to vector<2xf32>
    %85 = vector.shape_cast %84 : vector<2xf32> to vector<2x1xf32>
    %86 = tpu.reciprocal %85 {approx = true} : vector<2x1xf32> -> vector<2x1xf32>
    %87 = vector.broadcast %86 : vector<2x1xf32> to vector<2x16xf32>
    %88 = arith.mulf %83, %87 : vector<2x16xf32>
    %89 = vector.broadcast %35 : vector<2x1xf32> to vector<2x16xf32>
    %90 = arith.mulf %89, %88 : vector<2x16xf32>
    %cst_26 = arith.constant 1.000000e+00 : f32
    %91 = vector.broadcast %cst_26 : f32 to vector<2x1xf32>
    %92 = arith.subf %91, %35 : vector<2x1xf32>
    %93 = vector.broadcast %92 : vector<2x1xf32> to vector<2x16xf32>
    %94 = arith.mulf %93, %7 : vector<2x16xf32>
    %95 = arith.addf %90, %94 : vector<2x16xf32>
    %96 = vector.extract_strided_slice %95 {offsets = [0, 15], sizes = [2, 1], strides = [1, 1]} : vector<2x16xf32> to vector<2x1xf32>
    %97 = vector.extract_strided_slice %95 {offsets = [0, 0], sizes = [2, 15], strides = [1, 1]} : vector<2x16xf32> to vector<2x15xf32>
    %98 = tpu.concatenate %96, %97 in 1 : vector<2x1xf32>, vector<2x15xf32> -> vector<2x16xf32>
    %99 = vector.extract_strided_slice %95 {offsets = [0, 1], sizes = [2, 15], strides = [1, 1]} : vector<2x16xf32> to vector<2x15xf32>
    %100 = vector.extract_strided_slice %95 {offsets = [0, 0], sizes = [2, 1], strides = [1, 1]} : vector<2x16xf32> to vector<2x1xf32>
    %101 = tpu.concatenate %99, %100 in 1 : vector<2x15xf32>, vector<2x1xf32> -> vector<2x16xf32>
    %102 = vector.extract_strided_slice %63 {offsets = [0, 0], sizes = [2, 1], strides = [1, 1]} : vector<2x3xf32> to vector<2x1xf32>
    %103 = vector.broadcast %102 : vector<2x1xf32> to vector<2x16xf32>
    %104 = arith.mulf %98, %103 : vector<2x16xf32>
    %105 = vector.extract_strided_slice %63 {offsets = [0, 1], sizes = [2, 1], strides = [1, 1]} : vector<2x3xf32> to vector<2x1xf32>
    %106 = vector.broadcast %105 : vector<2x1xf32> to vector<2x16xf32>
    %107 = arith.mulf %95, %106 : vector<2x16xf32>
    %108 = arith.addf %104, %107 : vector<2x16xf32>
    %109 = vector.extract_strided_slice %63 {offsets = [0, 2], sizes = [2, 1], strides = [1, 1]} : vector<2x3xf32> to vector<2x1xf32>
    %110 = vector.broadcast %109 : vector<2x1xf32> to vector<2x16xf32>
    %111 = arith.mulf %101, %110 : vector<2x16xf32>
    %112 = arith.addf %108, %111 : vector<2x16xf32>
    %cst_27 = arith.constant 1.000000e-16 : f32
    %113 = vector.broadcast %cst_27 : f32 to vector<2x16xf32>
    %114 = arith.addf %112, %113 : vector<2x16xf32>
    %115 = math.log %114 : vector<2x16xf32>
    %116 = vector.broadcast %53 : vector<2x1xf32> to vector<2x16xf32>
    %117 = arith.mulf %116, %115 : vector<2x16xf32>
    %118 = math.exp %117 : vector<2x16xf32>
    %cst_28 = arith.constant dense<0.000000e+00> : vector<2xf32>
    %119 = vector.multi_reduction <add>, %118, %cst_28 [1] : vector<2x16xf32> to vector<2xf32>
    %120 = vector.shape_cast %119 : vector<2xf32> to vector<2x1xf32>
    %cst_29 = arith.constant 1.000000e-16 : f32
    %121 = vector.broadcast %cst_29 : f32 to vector<2x1xf32>
    %122 = arith.addf %120, %121 : vector<2x1xf32>
    %123 = tpu.reciprocal %122 {approx = true} : vector<2x1xf32> -> vector<2x1xf32>
    %124 = vector.broadcast %123 : vector<2x1xf32> to vector<2x16xf32>
    %125 = arith.mulf %118, %124 : vector<2x16xf32>
    %126 = arith.truncf %125 : vector<2x16xf32> to vector<2x16xbf16>
    %cst_30 = arith.constant dense<0.000000e+00> : vector<2x8xf32>
    %127 = tpu.matmul %126, %5, %cst_30 {dimension_numbers = #tpu.dot_dimension_numbers<[1], [0], [0], [1], [0, 0, 1, 1], [], []>} : vector<2x16xbf16>, vector<16x8xbf16>, vector<2x8xf32> -> vector<2x8xf32>
    %c0_31 = arith.constant 0 : index
    %c0_32 = arith.constant 0 : index
    %128 = vector.load %arg10[%c0_31, %c0_32] : memref<2x16xf32, #tpu.memory_space<vmem>>, vector<2x16xf32>
    tpu.vector_store %arg10[%c0_31, %c0_32], %125 {strides = array<i32>} : memref<2x16xf32, #tpu.memory_space<vmem>>, vector<2x16xf32>,
    %c0_33 = arith.constant 0 : index
    %c0_34 = arith.constant 0 : index
    %129 = vector.load %arg9[%c0_33, %c0_34] : memref<2x16xf32, #tpu.memory_space<vmem>>, vector<2x16xf32>
    tpu.vector_store %arg9[%c0_33, %c0_34], %125 {strides = array<i32>} : memref<2x16xf32, #tpu.memory_space<vmem>>, vector<2x16xf32>,
    %cst_35 = arith.constant 0.000000e+00 : f32
    %130 = vector.broadcast %cst_35 : f32 to vector<2x128xf32>
    %c0_36 = arith.constant 0 : index
    %c0_37 = arith.constant 0 : index
    %c0_38 = arith.constant 0 : index
    %131 = vector.load %arg7[%c0_36, %c0_37, %c0_38] : memref<1x2x128xf32, #tpu.memory_space<vmem>>, vector<1x2x128xf32>
    %132 = vector.shape_cast %131 : vector<1x2x128xf32> to vector<2x128xf32>
    %133 = vector.shape_cast %130 : vector<2x128xf32> to vector<1x2x128xf32>
    tpu.vector_store %arg7[%c0_36, %c0_37, %c0_38], %133 {strides = array<i32>} : memref<1x2x128xf32, #tpu.memory_space<vmem>>, vector<1x2x128xf32>,
    %c0_39 = arith.constant 0 : index
    %c0_40 = arith.constant 0 : index
    %c0_41 = arith.constant 0 : index
    %134 = vector.load %arg7[%c0_39, %c0_40, %c0_41] : memref<1x2x128xf32, #tpu.memory_space<vmem>>, vector<1x2x16xf32>
    %135 = vector.shape_cast %134 : vector<1x2x16xf32> to vector<2x16xf32>
    %136 = vector.shape_cast %125 : vector<2x16xf32> to vector<1x2x16xf32>
    tpu.vector_store %arg7[%c0_39, %c0_40, %c0_41], %136 {strides = array<i32>} : memref<1x2x128xf32, #tpu.memory_space<vmem>>, vector<1x2x16xf32>,
    %cst_42 = arith.constant 0.000000e+00 : f32
    %137 = vector.broadcast %cst_42 : f32 to vector<2x128xf32>
    %c0_43 = arith.constant 0 : index
    %c0_44 = arith.constant 0 : index
    %c0_45 = arith.constant 0 : index
    %138 = vector.load %arg8[%c0_43, %c0_44, %c0_45] : memref<1x2x128xf32, #tpu.memory_space<vmem>>, vector<1x2x128xf32>
    %139 = vector.shape_cast %138 : vector<1x2x128xf32> to vector<2x128xf32>
    %140 = vector.shape_cast %137 : vector<2x128xf32> to vector<1x2x128xf32>
    tpu.vector_store %arg8[%c0_43, %c0_44, %c0_45], %140 {strides = array<i32>} : memref<1x2x128xf32, #tpu.memory_space<vmem>>, vector<1x2x128xf32>,
    %c0_46 = arith.constant 0 : index
    %c0_47 = arith.constant 0 : index
    %c0_48 = arith.constant 0 : index
    %141 = vector.load %arg8[%c0_46, %c0_47, %c0_48] : memref<1x2x128xf32, #tpu.memory_space<vmem>>, vector<1x2x8xf32>
    %142 = vector.shape_cast %141 : vector<1x2x8xf32> to vector<2x8xf32>
    %143 = vector.shape_cast %127 : vector<2x8xf32> to vector<1x2x8xf32>
    tpu.vector_store %arg8[%c0_46, %c0_47, %c0_48], %143 {strides = array<i32>} : memref<1x2x128xf32, #tpu.memory_space<vmem>>, vector<1x2x8xf32>,
    return
  }
  func.func @transform_0(%arg0: i32) -> (i32, i32, i32) {
    %c0_i32 = arith.constant 0 : i32
    %c0_i32_0 = arith.constant 0 : i32
    %c0_i32_1 = arith.constant 0 : i32
    return %arg0, %c0_i32, %c0_i32_0 : i32, i32, i32
  }
  func.func @transform_1(%arg0: i32) -> (i32, i32) {
    %c0_i32 = arith.constant 0 : i32
    %c0_i32_0 = arith.constant 0 : i32
    %c0_i32_1 = arith.constant 0 : i32
    return %c0_i32, %c0_i32_0 : i32, i32
  }
  func.func @transform_2(%arg0: i32) -> (i32, i32) {
    %c0_i32 = arith.constant 0 : i32
    %c0_i32_0 = arith.constant 0 : i32
    %c0_i32_1 = arith.constant 0 : i32
    return %c0_i32, %c0_i32_0 : i32, i32
  }
  func.func @transform_3(%arg0: i32) -> (i32, i32) {
    %c0_i32 = arith.constant 0 : i32
    %c0_i32_0 = arith.constant 0 : i32
    %c0_i32_1 = arith.constant 0 : i32
    return %c0_i32, %c0_i32_0 : i32, i32
  }
  func.func @transform_4(%arg0: i32) -> (i32, i32) {
    %c0_i32 = arith.constant 0 : i32
    %c0_i32_0 = arith.constant 0 : i32
    %c0_i32_1 = arith.constant 0 : i32
    return %c0_i32, %c0_i32_0 : i32, i32
  }
  func.func @transform_5(%arg0: i32) -> (i32, i32) {
    %c0_i32 = arith.constant 0 : i32
    %c0_i32_0 = arith.constant 0 : i32
    %c0_i32_1 = arith.constant 0 : i32
    return %c0_i32, %c0_i32_0 : i32, i32
  }
  func.func @transform_6(%arg0: i32) -> (i32, i32, i32) {
    %c0_i32 = arith.constant 0 : i32
    %c0_i32_0 = arith.constant 0 : i32
    %c0_i32_1 = arith.constant 0 : i32
    return %arg0, %c0_i32, %c0_i32_0 : i32, i32, i32
  }
  func.func @transform_7(%arg0: i32) -> (i32, i32, i32) {
    %c0_i32 = arith.constant 0 : i32
    %c0_i32_0 = arith.constant 0 : i32
    %c0_i32_1 = arith.constant 0 : i32
    return %arg0, %c0_i32, %c0_i32_0 : i32, i32, i32
  }
  func.func @transform_8(%arg0: i32) -> (i32, i32) {
    %c0_i32 = arith.constant 0 : i32
    %c0_i32_0 = arith.constant 0 : i32
    %c0_i32_1 = arith.constant 0 : i32
    return %c0_i32, %c0_i32_0 : i32, i32
  }
}

</mosaic_0001>

<bundles_post_ra>
// kernel: ntm_read_head_sequence.1
= control target key start
LH: loop header
LB: loop body
LE: loop exit
PB: predicated region body
PF: predicated region fallthrough
CT: control target
= control target key end

     0   :  { %14 = vsyncpa [#allocation4], 0  ;;  %v531_v1 = vmov 0.0   ;;  %vm532_vm0 = vmmov 0   ;;  %s665_s0 = inlined_call_operand.vmem [shape: bf16[1,2,32], index: 0, kind: input, shape index: {}]   ;;  %s666_s1 = inlined_call_operand.vmem [shape: f32[2,16], index: 1, kind: input, shape index: {}, may-alias: {1,8}]   ;;  %s667_s2 = inlined_call_operand.vmem [shape: bf16[32,128], index: 2, kind: input, shape index: {}]   ;;  %s668_s3 = inlined_call_operand.vmem [shape: f32[1,128], index: 3, kind: input, shape index: {}]   ;;  %s669_s4 = inlined_call_operand.vmem [shape: bf16[16,8], index: 4, kind: input, shape index: {}]   ;;  %s670_s5 = inlined_call_operand.vmem [shape: f32[1,16], index: 5, kind: input, shape index: {}]   ;;  %s671_s6 = inlined_call_operand.hbm [shape: f32[1,2,128], index: 6, kind: output, shape index: {0}]   ;;  %s672_s7 = inlined_call_operand.hbm [shape: f32[1,2,128], index: 7, kind: output, shape index: {1}]   ;;  %s673_s8 = inlined_call_operand.vmem [shape: f32[2,16], index: 8, kind: output, shape index: {2}, may-alias: {1,8}]  }
   0x1   :  { %v452_v0 = vld [vmem:[%s667_s2] sm:$0xff]   ;;  %410 = vmatprep.subr.bf16.mxu0 %v531_v1  ;;  %358 = vst [vmem:[#allocation3] sm:$0x3] %v531_v1  ;;  %360 = vst [vmem:[#allocation5] sm:$0x3] %v531_v1  ;;  %418 = vmatprep.subr.bf16.mxu1 %v531_v1  ;;  %v453_v2 = vld [vmem:[%s667_s2 + $0x8] sm:$0xff]  }
   0x2   :  { %411 = vmatpush3.bf16.msra.mxu0 %v452_v0  ;;  %414 = vmatprep.mubr.msk.bf16.mxu0 %vm532_vm0, %v531_v1 }
   0x3   :  { %412 = vmatprep.subr.bf16.mxu0 %v531_v1  ;;  %420 = vmatprep.mubr.msk.bf16.mxu1 %vm532_vm0, %v531_v1 }
   0x4   :  { %15 = vsyncpa [#allocation6], 0  ;;  %v36_v3 = vld [vmem:[%s665_s0] sm:$0x1]  ;;  %vm64_vm1 = vcmask 261120   ;;  %vm157_vm2 = vcmask 64512  }
   0x5   :  { %v454_v4 = vld [vmem:[%s669_s4] sm:$0xff]   ;;  %v533_v6 = vmov 8   ;;  %vm134_vm3 = vcmask 99408   ;;  %vm205_vm4 = vcmask 58368   ;;  %vm34_vm7 = vcmask 123904   ;;  %s541_s15 = smov 1  }
   0x6   :  { %413 = vmatpush3.bf16.msra.mxu0 %v453_v2  ;;  %v162_v5 = vsel %vm157_vm2, %v454_v4, 0  ;;  %445 = vset.pattern.permute.xlu0 %v533_v6  ;;  %v394_v7 = vld [vmem:[%s668_s3] ss:$0 sm:$0xff]  ;;  %v535_v56 = vmov 9   ;;  %vm145_vm10 = vcmask 17408   ;;  %v537_v6 = vmov 11  }
   0x7   :  { %424 = vmatprep.subr.bf16.mxu0 %v531_v1  ;;  %419 = vmatpush3.bf16.xpose.msra.mxu1 %v162_v5  ;;  %v33_v33 = vld [vmem:[%s666_s1] sm:$0x3]  ;;  %s534_s1 = smov 118   ;;  %v536_v5 = vmov 10   ;;  %s542_s16 = smov 127   ;;  %vm265_vm11 = vcmask 7168  }
   0x8   :  { %35 = vst.msk [vmem:[#allocation2] sm:$0x3] %vm34_vm7, %v33_v33  ;;  %v401_v39 = vld [vmem:[%s670_s5] ss:$0 sm:$0xff]  ;;  %446 = vset.pattern.permute.xlu1 %v535_v56  ;;  %s540_s5 = smov 113   ;;  %s543_s17 = smov 15  }
   0x9   :  { %415 = vmatmul.mubr.msk.bf16.vlgmr.msra.gmra.mrb[0].mxu0 %vm64_vm1, %v36_v3  ;;  %vm273_vm12 = vcmask 121856   ;;  %vm312_vm13 = vcmask 130048   ;;  %s544_s20 = smov [#allocation3]  }
   0xa   :  { %426 = vmatprep.mubr.msk.bf16.mxu0 %vm532_vm0, %v531_v1  ;;  %425 = vmatpush3.bf16.msra.mxu0 %v454_v4  ;;  %s368_s21 = sshll.u32 %s544_s20, 4  ;;  %s369_s21 = int_to_ptr.vmem [resolvable:$true] %s368_s21 }
   0xb   :  { %s483_s22 = scalar_lea.vmem %s369_s21, 32  ;;  %p488_p1 = scmp.lt.s32.totalorder %s369_s21, %s369_s21 }
   0xc   :  { %p484_p0 = scmp.ne.s32.totalorder %s369_s21, %s483_s22  ;;  %p489_p2 = scmp.lt.s32.totalorder %s483_s22, %s483_s22 }
   0xe   :  { %p490_p3 = por %p489_p2, %p488_p1 }
  0x10   :  { %p491_p4 = pnand %p490_p3, %p484_p0 }
  0xdc   :  { %v102_v8 = vpop.f32.mrb[0].mxu0 }
  0xdd   :  { %v607_v9 = vadd.f32 %v394_v7, %v102_v8  ;;  %v416_v10 = vpop.f32.mrb[1].mxu0 }
  0xde   :  { %v105_v11 = vpop.f32.mrb[2].mxu0 }
  0xdf   :  { %v112_v12 = vand.u32 2147483647, %v607_v9  ;;  %v417_v13 = vpop.f32.mrb[3].mxu0  ;;  %v135_v14 = vsel %vm134_vm3, %v607_v9, -inf  ;;  %455 = vtanh.f32 %v607_v9  ;;  %v109_v29 = vmax.f32 %v607_v9, 0.0 }
  0xe0   :  { %136 = vmax.xlane.f32.xlu1 %v135_v14  ;;  %vm110_vm6 = vcmp.ne.f32.partialorder %v607_v9, %v607_v9  ;;  %v398_v57 = vmul.f32 -1.442695, %v607_v9  ;;  %v539_v13 = vmov 13  }
  0xe1   :  { %v113_v15 = vsub.f32 0.0, %v112_v12  ;;  %v538_v12 = vmov 12  }
  0xe3   :  { %v114_v16 = vmul.f32 1.442695, %v113_v15 }
  0xe5   :  { %457 = vpow2.f32 %v114_v16  ;;  %v40_v16 = vld [vmem:[#allocation2] sm:$0x3] }
  0xe9   :  { %v456_v17 = vpop.eup %455 }
  0xea   :  { %v151_v18 = vpack.c.bf16 %v456_v17, %v456_v17  ;;  %v204_v19 = vmul.f32 %v456_v17, %v456_v17 }
  0xec   :  { %421 = vmatmul.mubr.msk.bf16.vlgmr.msra.gmra.mrb[0].mxu1 %vm157_vm2, %v151_v18  ;;  %v206_v20 = vsel %vm205_vm4, %v204_v19, 0.0 }
  0xed   :  { %207 = vadd.xlane.f32.xlu0 %v206_v20 }
  0xef   :  { %v458_v21 = vpop.eup %457 }
  0xf0   :  { %v116_v22 = vadd.f32 1.0, %v458_v21  ;;  %v119_v23 = vmul.f32 -0.5, %v458_v21  ;;  %v122_v25 = vand.u32 2147483647, %v458_v21 }
  0xf2   :  { %459 = vlog2.f32 %v116_v22  ;;  %v120_v24 = vadd.f32 1.0, %v119_v23  ;;  %vm123_vm5 = vcmp.lt.f32.partialorder %v122_v25, 0.0004427343 }
  0xf4   :  { %v121_v28 = vmul.f32 %v458_v21, %v120_v24 }
  0xfc   :  { %v460_v26 = vpop.eup %459 }
  0xfd   :  { %v118_v27 = vmul.f32 0.6931472, %v460_v26 }
  0xff   :  { %v124_v30 = vsel %vm123_vm5, %v121_v28, %v118_v27 }
 0x100   :  { %v125_v31 = vadd.f32 %v124_v30, %v109_v29 }
 0x102   :  { %v618_v32 = vsel %vm110_vm6, %v607_v9, %v125_v31 }
 0x103   :  { %228 = vperm.xlu0 %445, %v618_v32   ;;  %v133_v21 = vadd.f32 1.0, %v618_v32 }
 0x107   :  { %447 = vset.pattern.permute.xlu0 %v536_v5 }
 0x16d   :  { %v137_v45 = vpop.xlane.xlu1 %136 }
 0x16e   :  { %v138_v52 = vsub.f32 %v607_v9, %v137_v45 }
 0x170   :  { %v139_v54 = vmul.f32 1.442695, %v138_v52 }
 0x17a   :  { %v208_v34 = vpop.xlane.xlu0 %207 }
 0x17b   :  { %461 = vrsqrt.f32 %v208_v34  ;;  %vm211_vm8 = vcmp.eq.f32.partialorder %v208_v34, inf  ;;  %v214_v38 = vand.u32 2147483648, %v208_v34  ;;  %vm213_vm9 = vcmp.eq.f32.partialorder %v208_v34, 0.0 }
 0x182   :  { %v229_v48 = vpop.permute.xlu0 %228 }
 0x185   :  { %v462_v35 = vpop.eup %461 }
 0x186   :  { %v210_v36 = vmul.f32 %v462_v35, %v208_v34 }
 0x188   :  { %v212_v37 = vsel %vm211_vm8, %v208_v34, %v210_v36 }
 0x189   :  { %v215_v40 = vsel %vm213_vm9, %v214_v38, %v212_v37 }
 0x18a   :  { %v222_v41 = vmul.f32 %v401_v39, %v215_v40 }
 0x18c   :  { %v223_v42 = vadd.f32 1e-16, %v222_v41 }
 0x18e   :  { %463 = vrcp.f32 %v223_v42 }
 0x18f   :  { %465 = vpow2.f32 %v139_v54 }
 0x190   :  { %467 = vpow2.f32 %v398_v57 }
 0x198   :  { %v464_v43 = vpop.eup %463 }
 0x199   :  { %v466_v55 = vpop.eup %465 }
 0x19a   :  { %v468_v62 = vpop.eup %467 }
 0x19b   :  { %v130_v0 = vadd.f32 1.0, %v468_v62 }
 0x1bf   :  { %v198_v44 = vpop.f32.mrb[0].mxu1 }
 0x1c0   :  { %v225_v46 = vmul.f32 %v464_v43, %v198_v44  ;;  %v422_v47 = vpop.f32.mrb[1].mxu1 }
 0x1c1   :  { %v201_v49 = vpop.f32.mrb[2].mxu1 }
 0x1c2   :  { %v423_v50 = vpop.f32.mrb[3].mxu1  ;;  %v231_v51 = vmul.f32 %v229_v48, %v225_v46 }
 0x1c4   :  { %v233_v53 = vsel %vm34_vm7, %v231_v51, -inf }
 0x1c5   :  { %234 = vmax.xlane.f32.xlu1 %v233_v53 }
 0x1d6   :  { %142 = vrot.lane.b32.xlu1 %v466_v55, %s534_s1 }
 0x252   :  { %v235_v58 = vpop.xlane.xlu1 %234 }
 0x253   :  { %v236_v59 = vsub.f32 %v231_v51, %v235_v58 }
 0x255   :  { %v237_v60 = vmul.f32 1.442695, %v236_v59 }
 0x256   :  { %v143_v61 = vpop.permute.xlu1 %142 }
 0x257   :  { %469 = vpow2.f32 %v237_v60  ;;  %v146_v63 = vsel %vm145_vm10, %v143_v61, 0.0 }
 0x258   :  { %147 = vadd.xlane.f32.xlu1 %v146_v63  ;;  %471 = vrcp.f32 %v130_v0 }
 0x261   :  { %v470_v1 = vpop.eup %469 }
 0x262   :  { %v239_v2 = vsel %vm34_vm7, %v470_v1, 0.0  ;;  %v472_v3 = vpop.eup %471 }
 0x263   :  { %240 = vadd.xlane.f32.xlu0 %v239_v2  ;;  %v250_v4 = vsub.f32 1.0, %v472_v3 }
 0x269   :  { %246 = vperm.xlu1 %446, %v472_v3  }
 0x26d   :  { %253 = vperm.xlu1 %446, %v250_v4  }
 0x271   :  { %448 = vset.pattern.permute.xlu1 %v537_v6 }
 0x2e5   :  { %v148_v7 = vpop.xlane.xlu1 %147 }
 0x2e6   :  { %473 = vrcp.f32 %v148_v7 }
 0x2e9   :  { %v247_v11 = vpop.permute.xlu1 %246 }
 0x2ed   :  { %v254_v15 = vpop.permute.xlu1 %253 }
 0x2ee   :  { %v256_v18 = vmul.f32 %v254_v15, %v40_v16 }
 0x2f0   :  { %v474_v8 = vpop.eup %473  ;;  %v241_v9 = vpop.xlane.xlu0 %240 }
 0x2f1   :  { %475 = vrcp.f32 %v241_v9  ;;  %v150_v10 = vmul.f32 %v474_v8, %v466_v55 }
 0x2f3   :  { %282 = vperm.xlu1 %448, %v150_v10   ;;  %277 = vperm.xlu0 %447, %v150_v10  }
 0x2f7   :  { %449 = vset.pattern.permute.xlu1 %v538_v12  ;;  %451 = vset.pattern.permute.xlu0 %v539_v13 }
 0x2f8   :  { %288 = vperm.xlu1 %449, %v150_v10  }
 0x2fb   :  { %v476_v14 = vpop.eup %475 }
 0x2fc   :  { %v243_v17 = vmul.f32 %v476_v14, %v470_v1  ;;  %450 = vset.pattern.permute.xlu1 %v539_v13 }
 0x2fe   :  { %v249_v19 = vmul.f32 %v247_v11, %v243_v17 }
 0x300   :  { %v257_v20 = vadd.f32 %v256_v18, %v249_v19 }
 0x302   :  { %259 = vrot.lane.b32.xlu1 %v257_v20, %s540_s5 }
 0x306   :  { %262 = vrot.lane.b32.xlu1 %v257_v20, %s541_s15 }
 0x30a   :  { %267 = vrot.lane.b32.xlu1 %v257_v20, %s542_s16 }
 0x30e   :  { %270 = vrot.lane.b32.xlu1 %v257_v20, %s543_s17 }
 0x312   :  { %298 = vperm.xlu1 %450, %v133_v21  }
 0x372   :  { %v283_v22 = vpop.permute.xlu1 %282  ;;  %v278_v28 = vpop.permute.xlu0 %277 }
 0x373   :  { %v285_v30 = vmul.f32 %v283_v22, %v257_v20 }
 0x377   :  { %v289_v23 = vpop.permute.xlu1 %288 }
 0x37b   :  { %v260_v24 = vpop.permute.xlu1 %259 }
 0x37f   :  { %v263_v25 = vpop.permute.xlu1 %262 }
 0x380   :  { %v266_v26 = vsel %vm265_vm11, %v260_v24, %v263_v25 }
 0x381   :  { %v280_v29 = vmul.f32 %v278_v28, %v266_v26 }
 0x383   :  { %v268_v27 = vpop.permute.xlu1 %267  ;;  %v286_v34 = vadd.f32 %v285_v30, %v280_v29 }
 0x387   :  { %v271_v31 = vpop.permute.xlu1 %270 }
 0x388   :  { %v274_v33 = vsel %vm273_vm12, %v268_v27, %v271_v31 }
 0x389   :  { %v291_v35 = vmul.f32 %v289_v23, %v274_v33 }
 0x38b   :  { %v292_v36 = vadd.f32 %v291_v35, %v286_v34 }
 0x38d   :  { %v293_v37 = vadd.f32 1e-16, %v292_v36 }
 0x38f   :  { %477 = vlog2.f32 %v293_v37 }
 0x391   :  { %v299_v39 = vpop.permute.xlu1 %298 }
 0x399   :  { %v478_v32 = vpop.eup %477 }
 0x39a   :  { %v295_v38 = vmul.f32 0.6931472, %v478_v32 }
 0x39c   :  { %v301_v40 = vmul.f32 %v299_v39, %v295_v38 }
 0x39e   :  { %v302_v41 = vmul.f32 1.442695, %v301_v40 }
 0x3a0   :  { %479 = vpow2.f32 %v302_v41 }
 0x3aa   :  { %v480_v42 = vpop.eup %479 }
 0x3ab   :  { %v304_v43 = vsel %vm34_vm7, %v480_v42, 0.0 }
 0x3ac   :  { %305 = vadd.xlane.f32.xlu1 %v304_v43 }
 0x439   :  { %v306_v44 = vpop.xlane.xlu1 %305 }
 0x43a   :  { %v307_v45 = vadd.f32 1e-16, %v306_v44 }
 0x43c   :  { %481 = vrcp.f32 %v307_v45 }
 0x446   :  { %v482_v46 = vpop.eup %481 }
 0x447   :  { %v309_v47 = vmul.f32 %v482_v46, %v480_v42 }
 0x449   :  { %356 = vst.msk [vmem:[#allocation2] sm:$0x3] %vm34_vm7, %v309_v47  ;;  %357 = vst.msk [vmem:[%s673_s8] sm:$0x3] %vm34_vm7, %v309_v47  ;;  %v310_v48 = vpack.c.bf16 %v309_v47, %v309_v47 }
 0x44a   :  { %359 = vst.msk [vmem:[#allocation3] sm:$0x3] %vm34_vm7, %v309_v47 }
 0x44b   :  { %427 = vmatmul.mubr.msk.bf16.vlgmr.msra.gmra.mrb[4].mxu0 %vm312_vm13, %v310_v48 }
 0x44c   :  { %494 = shalt.err (!%p491_p4)
}
 0x44d   :  { %s495_s25 = scalar_lea.hbm %s671_s6, 32 }
 0x44e   :  { %p496_p5 = scmp.ne.s32.totalorder %s671_s6, %s495_s25  ;;  %p499_p6 = scmp.lt.u32.totalorder %s495_s25, %s671_s6 }
 0x450   :  { %p501_p7 = pnand %p499_p6, %p496_p5 }
 0x452   :  { %504 = shalt.err (!%p501_p7)
}
 0x453   :  { %371 = dma.vmem_to_hbm [thread:$0]  %s369_s21, 32, %s671_s6, [#allocation4]  }
 0x454   :  { %s545_s9 = smov [#allocation5]  }
 0x455   :  { %s378_s10 = sshll.u32 %s545_s9, 4  ;;  %s379_s10 = int_to_ptr.vmem [resolvable:$true] %s378_s10 }
 0x456   :  { %s505_s11 = scalar_lea.vmem %s379_s10, 32  ;;  %p510_p9 = scmp.lt.s32.totalorder %s379_s10, %s379_s10 }
 0x457   :  { %p506_p8 = scmp.ne.s32.totalorder %s379_s10, %s505_s11  ;;  %p511_p10 = scmp.lt.s32.totalorder %s505_s11, %s505_s11 }
 0x459   :  { %p512_p11 = por %p511_p10, %p510_p9 }
 0x45b   :  { %p513_p12 = pnand %p512_p11, %p506_p8 }
 0x51e   :  { %v350_v49 = vpop.f32.mrb[4].mxu0 }
 0x51f   :  { %361 = vst.msk [vmem:[#allocation5] sm:$0x3] %vm205_vm4, %v350_v49  ;;  %v428_v50 = vpop.f32.mrb[5].mxu0 }
 0x520   :  { %v353_v51 = vpop.f32.mrb[6].mxu0 }
 0x521   :  { %516 = shalt.err (!%p513_p12)
}
 0x522   :  { %s517_s13 = scalar_lea.hbm %s672_s7, 32 }
 0x523   :  { %p518_p13 = scmp.ne.s32.totalorder %s672_s7, %s517_s13  ;;  %p521_p0 = scmp.lt.u32.totalorder %s517_s13, %s672_s7 }
 0x525   :  { %p523_p1 = pnand %p521_p0, %p518_p13 }
 0x527   :  { %526 = shalt.err (!%p523_p1)
}
 0x528   :  { %381 = dma.vmem_to_hbm [thread:$0]  %s379_s10, 32, %s672_s7, [#allocation6]   ;;  %v429_v52 = vpop.f32.mrb[7].mxu0 }
 0x529   :  { %527 = dma.done.wait [#allocation4], 32  }
 0x52a   :  { %528 = vsyncadd [#allocation4], 4294967264 }
 0x52b   :  { %529 = dma.done.wait [#allocation6], 32  }
 0x52c   :  { %530 = vsyncadd [#allocation6], 4294967264 }
 0x52d   :  { %392 = vsyncpa [#allocation4], 1 }
 0x52e   :  { %393 = vsyncpa [#allocation6], 1 }

</bundles_post_ra>
